<compile_context>
chip_gen: v7x
topology: tpu7x:2x2x1
jax: 0.10.0
libtpu: 0.0.40
codegen_flags: <defaults>
</compile_context>

<pallas_src>
import numpy as np
import jax
import jax.numpy as jnp
from jax.experimental import pallas as pl
from jax.experimental.pallas import tpu as pltpu


def gru_kernel(x_ref, h0_ref, w_ref, u_ref, wl_ref, y_ref, hfin_ref):
    Bp, H = h0_ref.shape                 # Bp is a multiple of 8
    TB = x_ref.shape[0]
    T_sel = TB // Bp                     # static Python int

    # ---- hoisted, loop-invariant loads & computation --------------------------
    x = x_ref[...]                       # (TB, P+1), last column == 1
    w = w_ref[...]                       # (P+1, 3H), last row == folded input bias
    # Fused input projection for all time steps and all gates (bias folded in).
    gi = jnp.dot(x, w, preferred_element_type=jnp.float32)          # (TB, 3H)
    gi_r = gi[:, 0:H]
    gi_z = gi[:, H:2 * H]
    gi_n = gi[:, 2 * H:3 * H]

    u_pack = u_ref[...]                  # (H+1, 3H): rows 0..H-1 = W_hh^T, row H = [0 | 0 | b_hh_n]
    u = u_pack[:H, :]                    # (H, 3H) recurrent weights
    bhn = jnp.broadcast_to(u_pack[H:H + 1, 2 * H:3 * H], (Bp, H))   # hoisted broadcast

    h = h0_ref[...].astype(jnp.float32)  # (Bp, H)
    hs = []

    # ---- statically unrolled recurrence (T_sel tiny, known at trace time) -----
    for t in range(T_sel):
        lo = t * Bp                      # sublane-aligned row offset
        gh = jnp.dot(h, u, preferred_element_type=jnp.float32)      # (Bp, 3H), single MXU op
        r = jax.nn.sigmoid(gi_r[lo:lo + Bp, :] + gh[:, 0:H])
        zg = jax.nn.sigmoid(gi_z[lo:lo + Bp, :] + gh[:, H:2 * H])
        n = jnp.tanh(gi_n[lo:lo + Bp, :] + r * (gh[:, 2 * H:3 * H] + bhn))
        h = (1.0 - zg) * n + zg * h
        hs.append(h)

    # ---- single writes after the loop ------------------------------------------
    hfin_ref[...] = h.astype(hfin_ref.dtype)

    h_all = jnp.concatenate(hs, axis=0)                              # (TB, H)
    h_aug = jnp.concatenate([h_all, jnp.ones((TB, 1), jnp.float32)], axis=1)
    y = jnp.dot(h_aug, wl_ref[...], preferred_element_type=jnp.float32)  # (TB, 1)
    y_ref[...] = y.astype(y_ref.dtype)


def gru_pallas(x_aug, h0_pad, w_aug, u_pack, wlin_aug):
    """x_aug: (T_sel*Bp, P+1); h0_pad: (Bp, H).  Returns (y (T_sel*Bp,1), h_fin (Bp,H))."""
    TB = x_aug.shape[0]
    Bp, H = h0_pad.shape

    def vmem():
        return pl.BlockSpec(memory_space=pltpu.MemorySpace.VMEM)

    return pl.pallas_call(
        gru_kernel,
        out_shape=(
            jax.ShapeDtypeStruct((TB, 1), jnp.float32),
            jax.ShapeDtypeStruct((Bp, H), jnp.float32),
        ),
        in_specs=[vmem() for _ in range(5)],
        out_specs=(vmem(), vmem()),
    )(x_aug, h0_pad, w_aug, u_pack, wlin_aug)


def gru_forward(X, z, connection, params, mode="train"):
    """Mirror of GRU.forward (only the mode='train' path exists in the reference)."""
    w_ih, w_hh, b_ih, b_hh, w_lin, b_lin = params

    # Static column selection + time-slice concat (host-side prep, as in PyTorch).
    idx = np.where(np.asarray(connection) != 0)[0]
    Xs = X[:, :, idx]                                                # (B, T, P)
    Xin = jnp.concatenate([Xs[:, 0:1, :], Xs[:, 11:-1, :]], axis=1)  # (B, T_sel, P)
    B, T_sel, P = Xin.shape
    H = w_hh.shape[1]
    Bp = -(-B // 8) * 8                                              # pad batch to sublane group

    # Time-major flatten with padded batch; append a ones column that folds the
    # input-side bias (b_ih + [b_hh_r, b_hh_z, 0]) into the projection matmul.
    x_tm = jnp.transpose(Xin, (1, 0, 2))                             # (T_sel, B, P)
    x_tm = jnp.pad(x_tm, ((0, 0), (0, Bp - B), (0, 0)))
    x_flat = x_tm.reshape(T_sel * Bp, P)
    x_aug = jnp.concatenate(
        [x_flat, jnp.ones((T_sel * Bp, 1), x_flat.dtype)], axis=1)   # (T_sel*Bp, P+1)

    h0_pad = jnp.pad(z[0], ((0, Bp - B), (0, 0)))                    # (Bp, H)

    # W_ih^T (P, 3H) stacked with the folded input-bias row -> (P+1, 3H).
    b_fold = jnp.concatenate([b_ih[:2 * H] + b_hh[:2 * H], b_ih[2 * H:]])
    w_aug = jnp.concatenate([jnp.transpose(w_ih), b_fold[None, :]], axis=0)

    # W_hh^T (H, 3H) packed with a final row carrying b_hh_n in the n-gate lanes.
    bhn_row = jnp.concatenate([jnp.zeros((2 * H,), jnp.float32), b_hh[2 * H:]])
    u_pack = jnp.concatenate([jnp.transpose(w_hh), bhn_row[None, :]], axis=0)

    # Linear head packed with its bias: (H+1, 1).
    wlin_aug = jnp.concatenate([jnp.transpose(w_lin), b_lin.reshape(1, 1)], axis=0)

    y_flat, h_fin = gru_pallas(x_aug, h0_pad, w_aug, u_pack, wlin_aug)

    # Undo padding / time-major flattening.
    X_right = jnp.transpose(y_flat.reshape(T_sel, Bp, 1)[:, :B, :], (1, 0, 2))
    hidden_out = h_fin[:B][None]                                     # (1, B, H)
    return X_right, hidden_out


def ref_forward_numpy(X, z, connection, params):
    """Pure NumPy reference of the PyTorch forward (correctness check)."""
    w_ih, w_hh, b_ih, b_hh, w_lin, b_lin = [np.asarray(p, np.float32) for p in params]
    idx = np.where(np.asarray(connection) != 0)[0]
    Xs = np.asarray(X, np.float32)[:, :, idx]
    Xin = np.concatenate([Xs[:, 0:1, :], Xs[:, 11:-1, :]], axis=1)
    B, T_sel, _ = Xin.shape
    H = w_hh.shape[1]
    h = np.asarray(z, np.float32)[0]
    sig = lambda a: 1.0 / (1.0 + np.exp(-a))
    outs = np.zeros((B, T_sel, 1), np.float32)
    for t in range(T_sel):
        x = Xin[:, t, :]
        gi = x @ w_ih.T + b_ih
        gh = h @ w_hh.T + b_hh
        r = sig(gi[:, :H] + gh[:, :H])
        zg = sig(gi[:, H:2 * H] + gh[:, H:2 * H])
        n = np.tanh(gi[:, 2 * H:] + r * gh[:, 2 * H:])
        h = (1.0 - zg) * n + zg * h
        outs[:, t, :] = h @ w_lin.T + b_lin
    return outs, h[None]


if __name__ == "__main__":
    # Shapes: full series p_full=6, connection selects num_series=4 of them,
    # hidden=32, batch=2, T=16 -> GRU sequence length = 1 + (15 - 11) = 5.
    p_full, num_series, hidden, batch, T = 6, 4, 32, 2, 16

    key = jax.random.PRNGKey(0)
    kx, k1, k2, k3, k4, k5, k6 = jax.random.split(key, 7)
    scale = 1.0 / np.sqrt(hidden)

    # Deterministic parameter init (PyTorch layouts, gate order [r, z, n]).
    w_ih = jax.random.uniform(k1, (3 * hidden, num_series), jnp.float32, -scale, scale)
    w_hh = jax.random.uniform(k2, (3 * hidden, hidden), jnp.float32, -scale, scale)
    b_ih = jax.random.uniform(k3, (3 * hidden,), jnp.float32, -scale, scale)
    b_hh = jax.random.uniform(k4, (3 * hidden,), jnp.float32, -scale, scale)
    w_lin = jax.random.uniform(k5, (1, hidden), jnp.float32, -scale, scale)
    b_lin = jax.random.uniform(k6, (1,), jnp.float32, -scale, scale)
    params = (w_ih, w_hh, b_ih, b_hh, w_lin, b_lin)

    X = jax.random.normal(kx, (batch, T, p_full), jnp.float32)
    connection = np.array([1, 0, 1, 1, 0, 1], np.float32)   # 4 nonzeros = num_series
    z = jnp.zeros((1, batch, hidden), jnp.float32)           # init_hidden(batch)

    X_right, hidden_out = gru_forward(X, z, connection, params)
    X_right = jax.block_until_ready(X_right)
    hidden_out = jax.block_until_ready(hidden_out)

    ref_y, ref_h = ref_forward_numpy(X, z, connection, params)
    assert X_right.shape == ref_y.shape and hidden_out.shape == ref_h.shape
    assert np.allclose(np.asarray(X_right), ref_y, atol=1e-4, rtol=1e-4)
    assert np.allclose(np.asarray(hidden_out), ref_h, atol=1e-4, rtol=1e-4)

    print("KERNEL_OK")
</pallas_src>

<mosaic_0001>
module attributes {stable_mosaic.version = 11 : i64} {
  func.func @gru_kernel(%arg0: memref<40x5xf32, #tpu.memory_space<vmem>>, %arg1: memref<8x32xf32, #tpu.memory_space<vmem>>, %arg2: memref<5x96xf32, #tpu.memory_space<vmem>>, %arg3: memref<33x96xf32, #tpu.memory_space<vmem>>, %arg4: memref<33x1xf32, #tpu.memory_space<vmem>>, %arg5: memref<40x1xf32, #tpu.memory_space<vmem>>, %arg6: memref<8x32xf32, #tpu.memory_space<vmem>>) attributes {dimension_semantics = [], scalar_prefetch = 0 : i64, scratch_operands = 0 : i64, tpu.core_type = #tpu.core_type<tc>} {
    %c0 = arith.constant 0 : index
    %c0_0 = arith.constant 0 : index
    %0 = vector.load %arg0[%c0, %c0_0] : memref<40x5xf32, #tpu.memory_space<vmem>>, vector<40x5xf32>
    %c0_1 = arith.constant 0 : index
    %c0_2 = arith.constant 0 : index
    %1 = vector.load %arg2[%c0_1, %c0_2] : memref<5x96xf32, #tpu.memory_space<vmem>>, vector<5x96xf32>
    %cst = arith.constant dense<0.000000e+00> : vector<40x96xf32>
    %2 = tpu.matmul %0, %1, %cst {dimension_numbers = #tpu.dot_dimension_numbers<[1], [0], [0], [1], [0, 0, 1, 1], [], []>} : vector<40x5xf32>, vector<5x96xf32>, vector<40x96xf32> -> vector<40x96xf32>
    %3 = vector.extract_strided_slice %2 {offsets = [0, 0], sizes = [40, 32], strides = [1, 1]} : vector<40x96xf32> to vector<40x32xf32>
    %4 = vector.extract_strided_slice %2 {offsets = [0, 32], sizes = [40, 32], strides = [1, 1]} : vector<40x96xf32> to vector<40x32xf32>
    %5 = vector.extract_strided_slice %2 {offsets = [0, 64], sizes = [40, 32], strides = [1, 1]} : vector<40x96xf32> to vector<40x32xf32>
    %c0_3 = arith.constant 0 : index
    %c0_4 = arith.constant 0 : index
    %6 = vector.load %arg3[%c0_3, %c0_4] : memref<33x96xf32, #tpu.memory_space<vmem>>, vector<33x96xf32>
    %7 = vector.extract_strided_slice %6 {offsets = [0, 0], sizes = [32, 96], strides = [1, 1]} : vector<33x96xf32> to vector<32x96xf32>
    %8 = vector.extract_strided_slice %6 {offsets = [32, 64], sizes = [1, 32], strides = [1, 1]} : vector<33x96xf32> to vector<1x32xf32>
    %9 = vector.shape_cast %8 : vector<1x32xf32> to vector<1x32xf32>
    %10 = vector.broadcast %9 : vector<1x32xf32> to vector<8x32xf32>
    %c0_5 = arith.constant 0 : index
    %c0_6 = arith.constant 0 : index
    %11 = vector.load %arg1[%c0_5, %c0_6] : memref<8x32xf32, #tpu.memory_space<vmem>>, vector<8x32xf32>
    %cst_7 = arith.constant dense<0.000000e+00> : vector<8x96xf32>
    %12 = tpu.matmul %11, %7, %cst_7 {dimension_numbers = #tpu.dot_dimension_numbers<[1], [0], [0], [1], [0, 0, 1, 1], [], []>} : vector<8x32xf32>, vector<32x96xf32>, vector<8x96xf32> -> vector<8x96xf32>
    %13 = vector.extract_strided_slice %3 {offsets = [0, 0], sizes = [8, 32], strides = [1, 1]} : vector<40x32xf32> to vector<8x32xf32>
    %14 = vector.extract_strided_slice %12 {offsets = [0, 0], sizes = [8, 32], strides = [1, 1]} : vector<8x96xf32> to vector<8x32xf32>
    %15 = arith.addf %13, %14 : vector<8x32xf32>
    %16 = arith.negf %15 : vector<8x32xf32>
    %17 = math.exp %16 : vector<8x32xf32>
    %cst_8 = arith.constant 1.000000e+00 : f32
    %18 = vector.broadcast %cst_8 : f32 to vector<8x32xf32>
    %19 = arith.addf %18, %17 : vector<8x32xf32>
    %20 = arith.divf %18, %19 : vector<8x32xf32>
    %21 = vector.extract_strided_slice %4 {offsets = [0, 0], sizes = [8, 32], strides = [1, 1]} : vector<40x32xf32> to vector<8x32xf32>
    %22 = vector.extract_strided_slice %12 {offsets = [0, 32], sizes = [8, 32], strides = [1, 1]} : vector<8x96xf32> to vector<8x32xf32>
    %23 = arith.addf %21, %22 : vector<8x32xf32>
    %24 = arith.negf %23 : vector<8x32xf32>
    %25 = math.exp %24 : vector<8x32xf32>
    %cst_9 = arith.constant 1.000000e+00 : f32
    %26 = vector.broadcast %cst_9 : f32 to vector<8x32xf32>
    %27 = arith.addf %26, %25 : vector<8x32xf32>
    %28 = arith.divf %26, %27 : vector<8x32xf32>
    %29 = vector.extract_strided_slice %5 {offsets = [0, 0], sizes = [8, 32], strides = [1, 1]} : vector<40x32xf32> to vector<8x32xf32>
    %30 = vector.extract_strided_slice %12 {offsets = [0, 64], sizes = [8, 32], strides = [1, 1]} : vector<8x96xf32> to vector<8x32xf32>
    %31 = arith.addf %30, %10 : vector<8x32xf32>
    %32 = arith.mulf %20, %31 : vector<8x32xf32>
    %33 = arith.addf %29, %32 : vector<8x32xf32>
    %34 = math.tanh %33 : vector<8x32xf32>
    %cst_10 = arith.constant 1.000000e+00 : f32
    %35 = vector.broadcast %cst_10 : f32 to vector<8x32xf32>
    %36 = arith.subf %35, %28 : vector<8x32xf32>
    %37 = arith.mulf %36, %34 : vector<8x32xf32>
    %38 = arith.mulf %28, %11 : vector<8x32xf32>
    %39 = arith.addf %37, %38 : vector<8x32xf32>
    %cst_11 = arith.constant dense<0.000000e+00> : vector<8x96xf32>
    %40 = tpu.matmul %39, %7, %cst_11 {dimension_numbers = #tpu.dot_dimension_numbers<[1], [0], [0], [1], [0, 0, 1, 1], [], []>} : vector<8x32xf32>, vector<32x96xf32>, vector<8x96xf32> -> vector<8x96xf32>
    %41 = vector.extract_strided_slice %3 {offsets = [8, 0], sizes = [8, 32], strides = [1, 1]} : vector<40x32xf32> to vector<8x32xf32>
    %42 = vector.extract_strided_slice %40 {offsets = [0, 0], sizes = [8, 32], strides = [1, 1]} : vector<8x96xf32> to vector<8x32xf32>
    %43 = arith.addf %41, %42 : vector<8x32xf32>
    %44 = arith.negf %43 : vector<8x32xf32>
    %45 = math.exp %44 : vector<8x32xf32>
    %cst_12 = arith.constant 1.000000e+00 : f32
    %46 = vector.broadcast %cst_12 : f32 to vector<8x32xf32>
    %47 = arith.addf %46, %45 : vector<8x32xf32>
    %48 = arith.divf %46, %47 : vector<8x32xf32>
    %49 = vector.extract_strided_slice %4 {offsets = [8, 0], sizes = [8, 32], strides = [1, 1]} : vector<40x32xf32> to vector<8x32xf32>
    %50 = vector.extract_strided_slice %40 {offsets = [0, 32], sizes = [8, 32], strides = [1, 1]} : vector<8x96xf32> to vector<8x32xf32>
    %51 = arith.addf %49, %50 : vector<8x32xf32>
    %52 = arith.negf %51 : vector<8x32xf32>
    %53 = math.exp %52 : vector<8x32xf32>
    %cst_13 = arith.constant 1.000000e+00 : f32
    %54 = vector.broadcast %cst_13 : f32 to vector<8x32xf32>
    %55 = arith.addf %54, %53 : vector<8x32xf32>
    %56 = arith.divf %54, %55 : vector<8x32xf32>
    %57 = vector.extract_strided_slice %5 {offsets = [8, 0], sizes = [8, 32], strides = [1, 1]} : vector<40x32xf32> to vector<8x32xf32>
    %58 = vector.extract_strided_slice %40 {offsets = [0, 64], sizes = [8, 32], strides = [1, 1]} : vector<8x96xf32> to vector<8x32xf32>
    %59 = arith.addf %58, %10 : vector<8x32xf32>
    %60 = arith.mulf %48, %59 : vector<8x32xf32>
    %61 = arith.addf %57, %60 : vector<8x32xf32>
    %62 = math.tanh %61 : vector<8x32xf32>
    %cst_14 = arith.constant 1.000000e+00 : f32
    %63 = vector.broadcast %cst_14 : f32 to vector<8x32xf32>
    %64 = arith.subf %63, %56 : vector<8x32xf32>
    %65 = arith.mulf %64, %62 : vector<8x32xf32>
    %66 = arith.mulf %56, %39 : vector<8x32xf32>
    %67 = arith.addf %65, %66 : vector<8x32xf32>
    %cst_15 = arith.constant dense<0.000000e+00> : vector<8x96xf32>
    %68 = tpu.matmul %67, %7, %cst_15 {dimension_numbers = #tpu.dot_dimension_numbers<[1], [0], [0], [1], [0, 0, 1, 1], [], []>} : vector<8x32xf32>, vector<32x96xf32>, vector<8x96xf32> -> vector<8x96xf32>
    %69 = vector.extract_strided_slice %3 {offsets = [16, 0], sizes = [8, 32], strides = [1, 1]} : vector<40x32xf32> to vector<8x32xf32>
    %70 = vector.extract_strided_slice %68 {offsets = [0, 0], sizes = [8, 32], strides = [1, 1]} : vector<8x96xf32> to vector<8x32xf32>
    %71 = arith.addf %69, %70 : vector<8x32xf32>
    %72 = arith.negf %71 : vector<8x32xf32>
    %73 = math.exp %72 : vector<8x32xf32>
    %cst_16 = arith.constant 1.000000e+00 : f32
    %74 = vector.broadcast %cst_16 : f32 to vector<8x32xf32>
    %75 = arith.addf %74, %73 : vector<8x32xf32>
    %76 = arith.divf %74, %75 : vector<8x32xf32>
    %77 = vector.extract_strided_slice %4 {offsets = [16, 0], sizes = [8, 32], strides = [1, 1]} : vector<40x32xf32> to vector<8x32xf32>
    %78 = vector.extract_strided_slice %68 {offsets = [0, 32], sizes = [8, 32], strides = [1, 1]} : vector<8x96xf32> to vector<8x32xf32>
    %79 = arith.addf %77, %78 : vector<8x32xf32>
    %80 = arith.negf %79 : vector<8x32xf32>
    %81 = math.exp %80 : vector<8x32xf32>
    %cst_17 = arith.constant 1.000000e+00 : f32
    %82 = vector.broadcast %cst_17 : f32 to vector<8x32xf32>
    %83 = arith.addf %82, %81 : vector<8x32xf32>
    %84 = arith.divf %82, %83 : vector<8x32xf32>
    %85 = vector.extract_strided_slice %5 {offsets = [16, 0], sizes = [8, 32], strides = [1, 1]} : vector<40x32xf32> to vector<8x32xf32>
    %86 = vector.extract_strided_slice %68 {offsets = [0, 64], sizes = [8, 32], strides = [1, 1]} : vector<8x96xf32> to vector<8x32xf32>
    %87 = arith.addf %86, %10 : vector<8x32xf32>
    %88 = arith.mulf %76, %87 : vector<8x32xf32>
    %89 = arith.addf %85, %88 : vector<8x32xf32>
    %90 = math.tanh %89 : vector<8x32xf32>
    %cst_18 = arith.constant 1.000000e+00 : f32
    %91 = vector.broadcast %cst_18 : f32 to vector<8x32xf32>
    %92 = arith.subf %91, %84 : vector<8x32xf32>
    %93 = arith.mulf %92, %90 : vector<8x32xf32>
    %94 = arith.mulf %84, %67 : vector<8x32xf32>
    %95 = arith.addf %93, %94 : vector<8x32xf32>
    %cst_19 = arith.constant dense<0.000000e+00> : vector<8x96xf32>
    %96 = tpu.matmul %95, %7, %cst_19 {dimension_numbers = #tpu.dot_dimension_numbers<[1], [0], [0], [1], [0, 0, 1, 1], [], []>} : vector<8x32xf32>, vector<32x96xf32>, vector<8x96xf32> -> vector<8x96xf32>
    %97 = vector.extract_strided_slice %3 {offsets = [24, 0], sizes = [8, 32], strides = [1, 1]} : vector<40x32xf32> to vector<8x32xf32>
    %98 = vector.extract_strided_slice %96 {offsets = [0, 0], sizes = [8, 32], strides = [1, 1]} : vector<8x96xf32> to vector<8x32xf32>
    %99 = arith.addf %97, %98 : vector<8x32xf32>
    %100 = arith.negf %99 : vector<8x32xf32>
    %101 = math.exp %100 : vector<8x32xf32>
    %cst_20 = arith.constant 1.000000e+00 : f32
    %102 = vector.broadcast %cst_20 : f32 to vector<8x32xf32>
    %103 = arith.addf %102, %101 : vector<8x32xf32>
    %104 = arith.divf %102, %103 : vector<8x32xf32>
    %105 = vector.extract_strided_slice %4 {offsets = [24, 0], sizes = [8, 32], strides = [1, 1]} : vector<40x32xf32> to vector<8x32xf32>
    %106 = vector.extract_strided_slice %96 {offsets = [0, 32], sizes = [8, 32], strides = [1, 1]} : vector<8x96xf32> to vector<8x32xf32>
    %107 = arith.addf %105, %106 : vector<8x32xf32>
    %108 = arith.negf %107 : vector<8x32xf32>
    %109 = math.exp %108 : vector<8x32xf32>
    %cst_21 = arith.constant 1.000000e+00 : f32
    %110 = vector.broadcast %cst_21 : f32 to vector<8x32xf32>
    %111 = arith.addf %110, %109 : vector<8x32xf32>
    %112 = arith.divf %110, %111 : vector<8x32xf32>
    %113 = vector.extract_strided_slice %5 {offsets = [24, 0], sizes = [8, 32], strides = [1, 1]} : vector<40x32xf32> to vector<8x32xf32>
    %114 = vector.extract_strided_slice %96 {offsets = [0, 64], sizes = [8, 32], strides = [1, 1]} : vector<8x96xf32> to vector<8x32xf32>
    %115 = arith.addf %114, %10 : vector<8x32xf32>
    %116 = arith.mulf %104, %115 : vector<8x32xf32>
    %117 = arith.addf %113, %116 : vector<8x32xf32>
    %118 = math.tanh %117 : vector<8x32xf32>
    %cst_22 = arith.constant 1.000000e+00 : f32
    %119 = vector.broadcast %cst_22 : f32 to vector<8x32xf32>
    %120 = arith.subf %119, %112 : vector<8x32xf32>
    %121 = arith.mulf %120, %118 : vector<8x32xf32>
    %122 = arith.mulf %112, %95 : vector<8x32xf32>
    %123 = arith.addf %121, %122 : vector<8x32xf32>
    %cst_23 = arith.constant dense<0.000000e+00> : vector<8x96xf32>
    %124 = tpu.matmul %123, %7, %cst_23 {dimension_numbers = #tpu.dot_dimension_numbers<[1], [0], [0], [1], [0, 0, 1, 1], [], []>} : vector<8x32xf32>, vector<32x96xf32>, vector<8x96xf32> -> vector<8x96xf32>
    %125 = vector.extract_strided_slice %3 {offsets = [32, 0], sizes = [8, 32], strides = [1, 1]} : vector<40x32xf32> to vector<8x32xf32>
    %126 = vector.extract_strided_slice %124 {offsets = [0, 0], sizes = [8, 32], strides = [1, 1]} : vector<8x96xf32> to vector<8x32xf32>
    %127 = arith.addf %125, %126 : vector<8x32xf32>
    %128 = arith.negf %127 : vector<8x32xf32>
    %129 = math.exp %128 : vector<8x32xf32>
    %cst_24 = arith.constant 1.000000e+00 : f32
    %130 = vector.broadcast %cst_24 : f32 to vector<8x32xf32>
    %131 = arith.addf %130, %129 : vector<8x32xf32>
    %132 = arith.divf %130, %131 : vector<8x32xf32>
    %133 = vector.extract_strided_slice %4 {offsets = [32, 0], sizes = [8, 32], strides = [1, 1]} : vector<40x32xf32> to vector<8x32xf32>
    %134 = vector.extract_strided_slice %124 {offsets = [0, 32], sizes = [8, 32], strides = [1, 1]} : vector<8x96xf32> to vector<8x32xf32>
    %135 = arith.addf %133, %134 : vector<8x32xf32>
    %136 = arith.negf %135 : vector<8x32xf32>
    %137 = math.exp %136 : vector<8x32xf32>
    %cst_25 = arith.constant 1.000000e+00 : f32
    %138 = vector.broadcast %cst_25 : f32 to vector<8x32xf32>
    %139 = arith.addf %138, %137 : vector<8x32xf32>
    %140 = arith.divf %138, %139 : vector<8x32xf32>
    %141 = vector.extract_strided_slice %5 {offsets = [32, 0], sizes = [8, 32], strides = [1, 1]} : vector<40x32xf32> to vector<8x32xf32>
    %142 = vector.extract_strided_slice %124 {offsets = [0, 64], sizes = [8, 32], strides = [1, 1]} : vector<8x96xf32> to vector<8x32xf32>
    %143 = arith.addf %142, %10 : vector<8x32xf32>
    %144 = arith.mulf %132, %143 : vector<8x32xf32>
    %145 = arith.addf %141, %144 : vector<8x32xf32>
    %146 = math.tanh %145 : vector<8x32xf32>
    %cst_26 = arith.constant 1.000000e+00 : f32
    %147 = vector.broadcast %cst_26 : f32 to vector<8x32xf32>
    %148 = arith.subf %147, %140 : vector<8x32xf32>
    %149 = arith.mulf %148, %146 : vector<8x32xf32>
    %150 = arith.mulf %140, %123 : vector<8x32xf32>
    %151 = arith.addf %149, %150 : vector<8x32xf32>
    %c0_27 = arith.constant 0 : index
    %c0_28 = arith.constant 0 : index
    %152 = vector.load %arg6[%c0_27, %c0_28] : memref<8x32xf32, #tpu.memory_space<vmem>>, vector<8x32xf32>
    tpu.vector_store %arg6[%c0_27, %c0_28], %151 {strides = array<i32>} : memref<8x32xf32, #tpu.memory_space<vmem>>, vector<8x32xf32>,
    %153 = tpu.concatenate %39, %67, %95, %123, %151 in 0 : vector<8x32xf32>, vector<8x32xf32>, vector<8x32xf32>, vector<8x32xf32>, vector<8x32xf32> -> vector<40x32xf32>
    %cst_29 = arith.constant 1.000000e+00 : f32
    %154 = vector.broadcast %cst_29 : f32 to vector<40x1xf32>
    %155 = tpu.concatenate %153, %154 in 1 : vector<40x32xf32>, vector<40x1xf32> -> vector<40x33xf32>
    %c0_30 = arith.constant 0 : index
    %c0_31 = arith.constant 0 : index
    %156 = vector.load %arg4[%c0_30, %c0_31] : memref<33x1xf32, #tpu.memory_space<vmem>>, vector<33x1xf32>
    %cst_32 = arith.constant dense<0.000000e+00> : vector<40x1xf32>
    %157 = tpu.matmul %155, %156, %cst_32 {dimension_numbers = #tpu.dot_dimension_numbers<[1], [0], [0], [1], [0, 0, 1, 1], [], []>} : vector<40x33xf32>, vector<33x1xf32>, vector<40x1xf32> -> vector<40x1xf32>
    %c0_33 = arith.constant 0 : index
    %c0_34 = arith.constant 0 : index
    %158 = vector.load %arg5[%c0_33, %c0_34] : memref<40x1xf32, #tpu.memory_space<vmem>>, vector<40x1xf32>
    tpu.vector_store %arg5[%c0_33, %c0_34], %157 {strides = array<i32>} : memref<40x1xf32, #tpu.memory_space<vmem>>, vector<40x1xf32>,
    return
  }
}

</mosaic_0001>

<bundles_post_ra>
// kernel: tpu_custom_call.1
= control target key start
LH: loop header
LB: loop body
LE: loop exit
PB: predicated region body
PF: predicated region fallthrough
CT: control target
= control target key end

     0   :  { %vm45_vm0 = vcmask 1044480   ;;  %v1072_v2 = vmov 0.0   ;;  %vm1073_vm1 = vmmov 0   ;;  %vm29_vm2 = vcmask 39936   ;;  %s1319_s0 = inlined_call_operand.vmem [shape: f32[40,5], index: 0, kind: input, shape index: {}]   ;;  %s1320_s1 = inlined_call_operand.vmem [shape: f32[8,32], index: 1, kind: input, shape index: {}]   ;;  %s1321_s2 = inlined_call_operand.vmem [shape: f32[5,96], index: 2, kind: input, shape index: {}]   ;;  %s1322_s3 = inlined_call_operand.vmem [shape: f32[33,96], index: 3, kind: input, shape index: {}]   ;;  %s1323_s4 = inlined_call_operand.vmem [shape: f32[33,1], index: 4, kind: input, shape index: {}]   ;;  %s1324_s5 = inlined_call_operand.vmem [shape: f32[40,1], index: 5, kind: output, shape index: {0}]   ;;  %s1325_s6 = inlined_call_operand.hbm [shape: f32[8,32], index: 6, kind: output, shape index: {1}]  }
   0x1   :  { %v28_v0 = vld [vmem:[%s1321_s2] sm:$0x1f]  ;;  %878 = vmatprep.subr.mxu0 %v1072_v2  ;;  %880 = vmatprep.mubr.msk.f32.mxu0 %vm1073_vm1, %v1072_v2  ;;  %v140_v4 = vld [vmem:[%s1322_s3 + $0x8] sm:$0xff]  ;;  %v141_v6 = vld [vmem:[%s1322_s3 + $0x10] sm:$0xff]  ;;  %v1074_v8 = vmov 0.0|0.0  }
   0x2   :  { %v23_v1 = vld [vmem:[%s1319_s0] sm:$0xff]  ;;  %879 = vmatpush3.msk.msra.mxu0 %vm45_vm0, %v28_v0  ;;  %v142_v7 = vld [vmem:[%s1322_s3 + $0x18] sm:$0xff]  ;;  %981 = vmatprep.subr.bf16.mxu1 %v1074_v8  ;;  %v24_v9 = vld [vmem:[%s1319_s0 + $0x8] sm:$0xff] }
   0x3   :  { %v139_v3 = vld [vmem:[%s1322_s3] sm:$0xff]  ;;  %881 = vmatmul.mubr.msk.f32.vlgmr.msra.gmra.mrb[0].mxu0 %vm29_vm2, %v23_v1  ;;  %975 = vmatprep.subr.bf16.mxu0 %v1074_v8  ;;  %v1146_v10 = vpack.c.bf16 %v142_v7, %v141_v6 }
   0x4   :  { %v1129_v5 = vpack.c.bf16 %v140_v4, %v139_v3  ;;  %883 = vmatprep.mubr.msk.f32.mxu0 %vm1073_vm1, %v1072_v2 }
   0x6   :  { %977 = vmatpush3.bf16.msra.mxu0 %v1129_v5 }
   0x7   :  { %12 = vsyncpa [#allocation3], 0  ;;  %978 = vmatprep.subr.bf16.mxu0 %v1074_v8  ;;  %983 = vmatpush3.bf16.msra.mxu1 %v1129_v5  ;;  %v25_v11 = vld [vmem:[%s1319_s0 + $0x10] sm:$0xff]  ;;  %v26_v12 = vld [vmem:[%s1319_s0 + $0x18] sm:$0xff]  ;;  %vm149_vm3 = vcmask 261120   ;;  %s1075_s18 = smov 64  }
   0x8   :  { %984 = vmatprep.subr.bf16.mxu1 %v1074_v8  ;;  %914 = vmatprep.mubr.msk.f32.mxu1 %vm1073_vm1, %v1072_v2  ;;  %v27_v13 = vld [vmem:[%s1319_s0 + $0x20] sm:$0xff]  ;;  %s1077_s19 = smov 32   ;;  %vm696_vm4 = vcmask 1040384   ;;  %vm680_vm5 = vcmask 269312   ;;  %vm790_vm6 = vcmask 7168   ;;  %s1078_s12 = smov [#allocation2]  }
   0x9   :  { %884 = vmatmul.mubr.msk.f32.gmra.mrb[2].mxu0 %vm29_vm2, %v24_v9  ;;  %v148_v14 = vld [vmem:[%s1320_s1] sm:$0xff]  ;;  %s804_s13 = sshll.u32 %s1078_s12, 4  ;;  %s805_s13 = int_to_ptr.vmem [resolvable:$true] %s804_s13 }
   0xa   :  { %886 = vmatprep.mubr.msk.f32.mxu0 %vm1073_vm1, %v1072_v2  ;;  %980 = vmatpush3.bf16.msra.mxu0 %v1146_v10  ;;  %v1197_v25 = vld [vmem:[%s1322_s3 + $0x20] ss:$0 sm:$0xff]  ;;  %s1076_s3 = smov 96   ;;  %s1048_s14 = scalar_lea.vmem %s805_s13, 128 }
   0xb   :  { %986 = vmatpush3.bf16.msra.mxu1 %v1146_v10  ;;  %987 = vmatprep.subr.bf16.mxu0 %v1074_v8  ;;  %p1049_p0 = scmp.ne.s32.totalorder %s805_s13, %s1048_s14  ;;  %p1053_p1 = scmp.lt.s32.totalorder %s805_s13, %s805_s13 }
   0xc   :  { %993 = vmatprep.subr.bf16.mxu1 %v1074_v8  ;;  %p1054_p2 = scmp.lt.s32.totalorder %s1048_s14, %s1048_s14 }
   0xd   :  { %887 = vmatmul.mubr.msk.f32.gmra.mrb[4].mxu0 %vm29_vm2, %v25_v11 }
   0xe   :  { %889 = vmatprep.mubr.msk.f32.mxu0 %vm1073_vm1, %v1072_v2  ;;  %p1055_p3 = por %p1054_p2, %p1053_p1 }
  0x10   :  { %p1056_p4 = pnand %p1055_p3, %p1049_p0 }
  0x11   :  { %890 = vmatmul.mubr.msk.f32.gmra.mrb[6].mxu0 %vm29_vm2, %v26_v12 }
  0x12   :  { %892 = vmatprep.mubr.msk.f32.mxu0 %vm1073_vm1, %v1072_v2 }
  0x15   :  { %893 = vmatmul.mubr.msk.f32.gmra.mrb[8].mxu0 %vm29_vm2, %v27_v13 }
  0x16   :  { %903 = vmatprep.mubr.msk.f32.mxu0 %vm1073_vm1, %v1072_v2 }
  0x19   :  { %904 = vmatmul.mubr.msk.f32.vlgmr.msra.gmra.mrb[10].mxu0 %vm149_vm3, %v148_v14 }
  0x1a   :  { %989 = vmatpush3.bf16.msra.mxu0 %v1129_v5  ;;  %925 = vmatprep.mubr.msk.f32.mxu0 %vm1073_vm1, %v1072_v2 }
  0x1b   :  { %990 = vmatprep.subr.bf16.mxu0 %v1074_v8 }
  0x1e   :  { %992 = vmatpush3.bf16.msra.mxu0 %v1146_v10 }
  0x1f   :  { %999 = vmatprep.subr.bf16.mxu0 %v1074_v8 }
  0xd6   :  { %v115_v15 = vpop.f32.mrb[0].mxu0 }
  0xd7   :  { %v882_v16 = vpop.f32.mrb[1].mxu0 }
  0xdc   :  { %v120_v17 = vpop.f32.mrb[2].mxu0 }
  0xdd   :  { %v885_v18 = vpop.f32.mrb[3].mxu0 }
  0xe0   :  { %v1188_v19 = vpop.f32.mrb[4].mxu0 }
  0xe1   :  { %v888_v20 = vpop.f32.mrb[5].mxu0 }
  0xe4   :  { %v1190_v21 = vpop.f32.mrb[6].mxu0 }
  0xe5   :  { %v891_v22 = vpop.f32.mrb[7].mxu0 }
  0xe8   :  { %v1192_v23 = vpop.f32.mrb[8].mxu0 }
  0xe9   :  { %v894_v24 = vpop.f32.mrb[9].mxu0 }
  0xea   :  { %v675_v24 = vld [vmem:[%s1323_s4] sm:$0xff] }
  0xec   :  { %v219_v26 = vpop.f32.mrb[10].mxu0 }
  0xed   :  { %v223_v27 = vadd.f32 %v219_v26, %v115_v15  ;;  %v905_v28 = vpop.f32.mrb[11].mxu0  ;;  %v230_v29 = vadd.f32 %v1197_v25, %v219_v26  ;;  %v676_v26 = vld [vmem:[%s1323_s4 + $0x8] sm:$0xff] }
  0xee   :  { %v678_v28 = vld [vmem:[%s1323_s4 + $0x18] sm:$0xff] }
  0xef   :  { %232 = vrot.lane.b32.xlu0 %v230_v29, %s1075_s18  ;;  %v822_v30 = vmul.f32 -1.442695, %v223_v27  ;;  %v677_v27 = vld [vmem:[%s1323_s4 + $0x10] sm:$0xff] }
  0xf1   :  { %1018 = vpow2.f32 %v822_v30  ;;  %v1009_v30 = vpack.c.bf16 %v678_v28, %v677_v27 }
  0xfb   :  { %v1019_v31 = vpop.eup %1018 }
  0xfc   :  { %v227_v32 = vadd.f32 1.0, %v1019_v31  ;;  %v679_v31 = vld [vmem:[%s1323_s4 + $0x20] sm:$0x1] }
  0xfe   :  { %1020 = vrcp.f32 %v227_v32 }
 0x108   :  { %v1021_v33 = vpop.eup %1020 }
 0x109   :  { %v242_v40 = vsub.f32 1.0, %v1021_v33 }
 0x161   :  { %v233_v34 = vpop.permute.xlu0 %232 }
 0x162   :  { %v235_v35 = vmul.f32 %v1021_v33, %v233_v34 }
 0x164   :  { %237 = vrot.lane.b32.xlu0 %v235_v35, %s1075_s18 }
 0x1d6   :  { %v238_v36 = vpop.permute.xlu0 %237 }
 0x1d7   :  { %v240_v37 = vadd.f32 %v238_v36, %v115_v15 }
 0x1d9   :  { %1022 = vtanh.f32 %v240_v37 }
 0x1e3   :  { %v1023_v38 = vpop.eup %1022 }
 0x1e4   :  { %244 = vrot.lane.b32.xlu1 %v1023_v38, %s1076_s3 }
 0x1e8   :  { %248 = vrot.lane.b32.xlu1 %v148_v14, %s1077_s19 }
 0x256   :  { %v245_v39 = vpop.permute.xlu1 %244 }
 0x257   :  { %v247_v42 = vmul.f32 %v245_v39, %v242_v40 }
 0x25a   :  { %v249_v41 = vpop.permute.xlu1 %248 }
 0x25b   :  { %v251_v43 = vmul.f32 %v1021_v33, %v249_v41 }
 0x25d   :  { %v252_v44 = vadd.f32 %v251_v43, %v247_v42 }
 0x25f   :  { %254 = vrot.lane.b32.xlu0 %v252_v44, %s1076_s3 }
 0x2d1   :  { %v1204_v45 = vpop.permute.xlu0 %254 }
 0x2d2   :  { %915 = vmatmul.mubr.msk.f32.vlgmr.msra.gmra.mrb[0].mxu1 %vm149_vm3, %v1204_v45  ;;  %v670_v32 = vsel %vm149_vm3, %v1204_v45, 1.0 }
 0x2d3   :  { %995 = vmatpush3.bf16.msra.mxu1 %v1129_v5  ;;  %936 = vmatprep.mubr.msk.f32.mxu1 %vm1073_vm1, %v1072_v2 }
 0x2d4   :  { %996 = vmatprep.subr.bf16.mxu1 %v1074_v8 }
 0x2d7   :  { %998 = vmatpush3.bf16.msra.mxu1 %v1146_v10 }
 0x2d8   :  { %1005 = vmatprep.subr.bf16.mxu1 %v1074_v8 }
 0x3a5   :  { %v324_v46 = vpop.f32.mrb[0].mxu1 }
 0x3a6   :  { %v328_v47 = vadd.f32 %v324_v46, %v120_v17  ;;  %v335_v48 = vadd.f32 %v1197_v25, %v324_v46  ;;  %v916_v49 = vpop.f32.mrb[1].mxu1 }
 0x3a8   :  { %337 = vrot.lane.b32.xlu1 %v335_v48, %s1075_s18  ;;  %v824_v50 = vmul.f32 -1.442695, %v328_v47 }
 0x3aa   :  { %1024 = vpow2.f32 %v824_v50 }
 0x3b4   :  { %v1025_v51 = vpop.eup %1024 }
 0x3b5   :  { %v332_v52 = vadd.f32 1.0, %v1025_v51 }
 0x3b7   :  { %1026 = vrcp.f32 %v332_v52 }
 0x3c1   :  { %v1027_v53 = vpop.eup %1026 }
 0x3c2   :  { %v347_v59 = vsub.f32 1.0, %v1027_v53  ;;  %v353_v61 = vmul.f32 %v1027_v53, %v252_v44 }
 0x41a   :  { %v338_v54 = vpop.permute.xlu1 %337 }
 0x41b   :  { %v340_v55 = vmul.f32 %v1027_v53, %v338_v54 }
 0x41d   :  { %342 = vrot.lane.b32.xlu0 %v340_v55, %s1075_s18 }
 0x48f   :  { %v343_v56 = vpop.permute.xlu0 %342 }
 0x490   :  { %v345_v57 = vadd.f32 %v343_v56, %v120_v17 }
 0x492   :  { %1028 = vtanh.f32 %v345_v57 }
 0x49c   :  { %v1029_v58 = vpop.eup %1028 }
 0x49d   :  { %349 = vrot.lane.b32.xlu1 %v1029_v58, %s1076_s3 }
 0x50f   :  { %v350_v60 = vpop.permute.xlu1 %349 }
 0x510   :  { %v352_v62 = vmul.f32 %v350_v60, %v347_v59 }
 0x512   :  { %v354_v63 = vadd.f32 %v353_v61, %v352_v62 }
 0x514   :  { %356 = vrot.lane.b32.xlu0 %v354_v63, %s1076_s3 }
 0x586   :  { %v357_v0 = vpop.permute.xlu0 %356 }
 0x587   :  { %926 = vmatmul.mubr.msk.f32.vlgmr.msra.gmra.mrb[12].mxu0 %vm149_vm3, %v357_v0 }
 0x588   :  { %1001 = vmatpush3.bf16.msra.mxu0 %v1129_v5  ;;  %947 = vmatprep.mubr.msk.f32.mxu0 %vm1073_vm1, %v1072_v2 }
 0x589   :  { %1002 = vmatprep.subr.bf16.mxu0 %v1074_v8 }
 0x58c   :  { %1004 = vmatpush3.bf16.msra.mxu0 %v1146_v10 }
 0x65a   :  { %v426_v1 = vpop.f32.mrb[12].mxu0 }
 0x65b   :  { %v430_v3 = vadd.f32 %v426_v1, %v1188_v19  ;;  %v437_v4 = vadd.f32 %v1197_v25, %v426_v1  ;;  %v927_v6 = vpop.f32.mrb[13].mxu0 }
 0x65d   :  { %439 = vrot.lane.b32.xlu1 %v437_v4, %s1075_s18  ;;  %v826_v7 = vmul.f32 -1.442695, %v430_v3 }
 0x65f   :  { %1030 = vpow2.f32 %v826_v7 }
 0x669   :  { %v1031_v9 = vpop.eup %1030 }
 0x66a   :  { %v434_v11 = vadd.f32 1.0, %v1031_v9 }
 0x66c   :  { %1032 = vrcp.f32 %v434_v11 }
 0x676   :  { %v1033_v5 = vpop.eup %1032 }
 0x677   :  { %v449_v16 = vsub.f32 1.0, %v1033_v5  ;;  %v455_v18 = vmul.f32 %v1033_v5, %v354_v63 }
 0x6cf   :  { %v440_v12 = vpop.permute.xlu1 %439 }
 0x6d0   :  { %v442_v13 = vmul.f32 %v1033_v5, %v440_v12 }
 0x6d2   :  { %444 = vrot.lane.b32.xlu0 %v442_v13, %s1075_s18 }
 0x744   :  { %v445_v14 = vpop.permute.xlu0 %444 }
 0x745   :  { %v447_v10 = vadd.f32 %v445_v14, %v1188_v19  ;;  %v1006_v19 = vpack.c.bf16 %v676_v26, %v675_v24 }
 0x747   :  { %1034 = vtanh.f32 %v447_v10 }
 0x751   :  { %v1035_v15 = vpop.eup %1034 }
 0x752   :  { %451 = vrot.lane.b32.xlu1 %v1035_v15, %s1076_s3 }
 0x7c4   :  { %v452_v17 = vpop.permute.xlu1 %451 }
 0x7c5   :  { %v454_v20 = vmul.f32 %v452_v17, %v449_v16 }
 0x7c7   :  { %v456_v22 = vadd.f32 %v455_v18, %v454_v20 }
 0x7c9   :  { %458 = vrot.lane.b32.xlu0 %v456_v22, %s1076_s3 }
 0x83b   :  { %v459_v29 = vpop.permute.xlu0 %458 }
 0x83c   :  { %937 = vmatmul.mubr.msk.f32.vlgmr.msra.gmra.mrb[2].mxu1 %vm149_vm3, %v459_v29  ;;  %v672_v33 = vsel %vm149_vm3, %v459_v29, 1.0 }
 0x83d   :  { %1007 = vmatpush3.bf16.msra.mxu1 %v1006_v19  ;;  %960 = vmatprep.mubr.msk.f32.mxu1 %vm1073_vm1, %v1072_v2 }
 0x83e   :  { %1008 = vmatprep.subr.bf16.mxu1 %v1074_v8  ;;  %v671_v8 = vsel %vm149_vm3, %v357_v0, 1.0 }
 0x841   :  { %1010 = vmatpush3.bf16.msra.mxu1 %v1009_v30 }
 0x842   :  { %958 = vmatprep.subr.mxu1 %v1072_v2 }
 0x845   :  { %959 = vmatpush3.msk.msra.mxu1 %vm696_vm4, %v679_v31 }
 0x846   :  { %961 = vmatmul.mubr.msk.f32.vlgmr.msra.gmra.mrb[4].mxu1 %vm680_vm5, %v670_v32 }
 0x847   :  { %963 = vmatprep.mubr.msk.f32.mxu1 %vm1073_vm1, %v1072_v2 }
 0x84a   :  { %964 = vmatmul.mubr.msk.f32.gmra.mrb[6].mxu1 %vm680_vm5, %v671_v8 }
 0x84b   :  { %966 = vmatprep.mubr.msk.f32.mxu1 %vm1073_vm1, %v1072_v2 }
 0x84e   :  { %967 = vmatmul.mubr.msk.f32.gmra.mrb[8].mxu1 %vm680_vm5, %v672_v33 }
 0x84f   :  { %969 = vmatprep.mubr.msk.f32.mxu1 %vm1073_vm1, %v1072_v2 }
 0x90f   :  { %v528_v34 = vpop.f32.mrb[2].mxu1 }
 0x910   :  { %v532_v35 = vadd.f32 %v528_v34, %v1190_v21  ;;  %v539_v36 = vadd.f32 %v1197_v25, %v528_v34  ;;  %v938_v37 = vpop.f32.mrb[3].mxu1 }
 0x912   :  { %541 = vrot.lane.b32.xlu1 %v539_v36, %s1075_s18  ;;  %v828_v44 = vmul.f32 -1.442695, %v532_v35 }
 0x914   :  { %1036 = vpow2.f32 %v828_v44 }
 0x919   :  { %v766_v38 = vpop.f32.mrb[4].mxu1 }
 0x91a   :  { %791 = vst.msk [vmem:[%s1324_s5] sm:$0xff] %vm790_vm6, %v766_v38  ;;  %v962_v39 = vpop.f32.mrb[5].mxu1 }
 0x91d   :  { %v771_v40 = vpop.f32.mrb[6].mxu1 }
 0x91e   :  { %792 = vst.msk [vmem:[%s1324_s5 + $0x8] sm:$0xff] %vm790_vm6, %v771_v40  ;;  %v965_v41 = vpop.f32.mrb[7].mxu1  ;;  %v1037_v45 = vpop.eup %1036 }
 0x91f   :  { %v536_v46 = vadd.f32 1.0, %v1037_v45 }
 0x921   :  { %v776_v42 = vpop.f32.mrb[8].mxu1  ;;  %1038 = vrcp.f32 %v536_v46 }
 0x922   :  { %793 = vst.msk [vmem:[%s1324_s5 + $0x10] sm:$0xff] %vm790_vm6, %v776_v42  ;;  %v968_v43 = vpop.f32.mrb[9].mxu1 }
 0x92b   :  { %v1039_v47 = vpop.eup %1038 }
 0x92c   :  { %v551_v53 = vsub.f32 1.0, %v1039_v47  ;;  %v557_v55 = vmul.f32 %v1039_v47, %v456_v22 }
 0x984   :  { %v542_v48 = vpop.permute.xlu1 %541 }
 0x985   :  { %v544_v49 = vmul.f32 %v1039_v47, %v542_v48 }
 0x987   :  { %546 = vrot.lane.b32.xlu0 %v544_v49, %s1075_s18 }
 0x9f9   :  { %v547_v50 = vpop.permute.xlu0 %546 }
 0x9fa   :  { %v549_v51 = vadd.f32 %v547_v50, %v1190_v21 }
 0x9fc   :  { %1040 = vtanh.f32 %v549_v51 }
 0xa06   :  { %v1041_v52 = vpop.eup %1040 }
 0xa07   :  { %553 = vrot.lane.b32.xlu1 %v1041_v52, %s1076_s3 }
 0xa79   :  { %v554_v54 = vpop.permute.xlu1 %553 }
 0xa7a   :  { %v556_v56 = vmul.f32 %v554_v54, %v551_v53 }
 0xa7c   :  { %v558_v57 = vadd.f32 %v557_v55, %v556_v56 }
 0xa7e   :  { %560 = vrot.lane.b32.xlu0 %v558_v57, %s1076_s3 }
 0xaf0   :  { %v561_v58 = vpop.permute.xlu0 %560 }
 0xaf1   :  { %v673_v59 = vsel %vm149_vm3, %v561_v58, 1.0  ;;  %948 = vmatmul.mubr.msk.f32.vlgmr.msra.gmra.mrb[14].mxu0 %vm149_vm3, %v561_v58 }
 0xaf2   :  { %970 = vmatmul.mubr.msk.f32.gmra.mrb[10].mxu1 %vm680_vm5, %v673_v59 }
 0xaf3   :  { %972 = vmatprep.mubr.msk.f32.mxu1 %vm1073_vm1, %v1072_v2 }
 0xbc4   :  { %v630_v21 = vpop.f32.mrb[14].mxu0 }
 0xbc5   :  { %v634_v60 = vadd.f32 %v630_v21, %v1192_v23  ;;  %v641_v61 = vadd.f32 %v1197_v25, %v630_v21  ;;  %v949_v62 = vpop.f32.mrb[15].mxu0  ;;  %v781_v63 = vpop.f32.mrb[10].mxu1 }
 0xbc6   :  { %794 = vst.msk [vmem:[%s1324_s5 + $0x18] sm:$0xff] %vm790_vm6, %v781_v63  ;;  %v971_v0 = vpop.f32.mrb[11].mxu1 }
 0xbc7   :  { %643 = vrot.lane.b32.xlu1 %v641_v61, %s1075_s18  ;;  %v830_v1 = vmul.f32 -1.442695, %v634_v60 }
 0xbc9   :  { %1042 = vpow2.f32 %v830_v1 }
 0xbd3   :  { %v1043_v3 = vpop.eup %1042 }
 0xbd4   :  { %v638_v4 = vadd.f32 1.0, %v1043_v3 }
 0xbd6   :  { %1044 = vrcp.f32 %v638_v4 }
 0xbe0   :  { %v1045_v2 = vpop.eup %1044 }
 0xbe1   :  { %v653_v5 = vsub.f32 1.0, %v1045_v2  ;;  %v659_v13 = vmul.f32 %v1045_v2, %v558_v57 }
 0xc39   :  { %v644_v6 = vpop.permute.xlu1 %643 }
 0xc3a   :  { %v646_v7 = vmul.f32 %v1045_v2, %v644_v6 }
 0xc3c   :  { %648 = vrot.lane.b32.xlu0 %v646_v7, %s1075_s18 }
 0xcae   :  { %v649_v25 = vpop.permute.xlu0 %648 }
 0xcaf   :  { %v651_v9 = vadd.f32 %v649_v25, %v1192_v23 }
 0xcb1   :  { %1046 = vtanh.f32 %v651_v9 }
 0xcbb   :  { %v1047_v11 = vpop.eup %1046 }
 0xcbc   :  { %655 = vrot.lane.b32.xlu1 %v1047_v11, %s1076_s3 }
 0xd2e   :  { %v656_v12 = vpop.permute.xlu1 %655 }
 0xd2f   :  { %v658_v14 = vmul.f32 %v656_v12, %v653_v5 }
 0xd31   :  { %v660_v10 = vadd.f32 %v659_v13, %v658_v14 }
 0xd33   :  { %662 = vrot.lane.b32.xlu0 %v660_v10, %s1076_s3 }
 0xda5   :  { %v663_v15 = vpop.permute.xlu0 %662 }
 0xda6   :  { %665 = vst.msk [vmem:[#allocation2] sm:$0xff] %vm149_vm3, %v663_v15  ;;  %v674_v16 = vsel %vm149_vm3, %v663_v15, 1.0 }
 0xda7   :  { %973 = vmatmul.mubr.msk.f32.gmra.mrb[12].mxu1 %vm680_vm5, %v674_v16 }
 0xda8   :  { %1059 = shalt.err (!%p1056_p4)
}
 0xda9   :  { %s1060_s17 = scalar_lea.hbm %s1325_s6, 128 }
 0xdaa   :  { %p1061_p5 = scmp.ne.s32.totalorder %s1325_s6, %s1060_s17  ;;  %p1064_p6 = scmp.lt.u32.totalorder %s1060_s17, %s1325_s6 }
 0xdac   :  { %p1066_p7 = pnand %p1064_p6, %p1061_p5 }
 0xdae   :  { %1069 = shalt.err (!%p1066_p7)
}
 0xdaf   :  { %807 = dma.vmem_to_hbm [thread:$0]  %s805_s13, 128, %s1325_s6, [#allocation3]  }
 0xe7a   :  { %v786_v23 = vpop.f32.mrb[12].mxu1 }
 0xe7b   :  { %795 = vst.msk [vmem:[%s1324_s5 + $0x20] sm:$0xff] %vm790_vm6, %v786_v23  ;;  %v974_v17 = vpop.f32.mrb[13].mxu1 }
 0xe7c   :  { %1070 = dma.done.wait [#allocation3], 128  }
 0xe7d   :  { %1071 = vsyncadd [#allocation3], 4294967168 }
 0xe7e   :  { %813 = vsyncpa [#allocation3], 1 }

</bundles_post_ra>
